<compile_context>
chip_gen: v6e
topology: v6e:2x2x1
jax: 0.10.0
libtpu: 0.0.40
codegen_flags: <defaults>
</compile_context>

<pallas_src>
import functools

import jax
import jax.numpy as jnp
from jax.experimental import pallas as pl
from jax.experimental.pallas import tpu as pltpu


def _round_up(x, m):
    return ((x + m - 1) // m) * m


def _noise_processor_kernel(x_ref, w1_ref, b1_ref, w2_ref, p_ref, o_ref, *,
                            eps, exact_gelu):
    # MXU fast path: operands in the (possibly bf16) weight dtype, f32 accum.
    x = x_ref[...].astype(w1_ref.dtype)                          # (TM, D)
    h = jnp.dot(x, w1_ref[...], preferred_element_type=jnp.float32)
    h = h + b1_ref[...]                                          # (TM, H) f32

    if exact_gelu:
        # torch.nn.GELU() default (erf) -- VALU polynomial, slower on v6e/v7x.
        h = 0.5 * h * (1.0 + jax.lax.erf(h * jnp.float32(0.7071067811865476)))
    else:
        # tanh-approximate GELU: tanh is a native EUP op -> frees VALU slots.
        c = jnp.float32(0.7978845608028654)                      # sqrt(2/pi)
        h = 0.5 * h * (1.0 + jnp.tanh(c * (h + jnp.float32(0.044715) * (h * h * h))))

    y = jnp.dot(h.astype(w2_ref.dtype), w2_ref[...],
                preferred_element_type=jnp.float32)              # (TM, D) f32

    p = p_ref[...]                                               # (3, D) f32
    b2, gamma, beta = p[0:1, :], p[1:2, :], p[2:3, :]
    y = y + b2

    # LayerNorm over last dim: centered (two-pass) biased variance, like torch.
    d_inv = jnp.float32(1.0 / y.shape[-1])
    mean = jnp.sum(y, axis=-1, keepdims=True) * d_inv
    yc = y - mean
    var = jnp.sum(yc * yc, axis=-1, keepdims=True) * d_inv
    out = yc * jax.lax.rsqrt(var + jnp.float32(eps))
    out = out * gamma + beta

    o_ref[...] = out.astype(o_ref.dtype)


def _vmem_limit_bytes(tm_eff, D, H, in_itemsize, out_itemsize, w_itemsize):
    tile = (
        2 * tm_eff * D * in_itemsize      # input tile, double-buffered
        + 2 * tm_eff * D * out_itemsize   # output tile, double-buffered
        + 2 * (D * H) * w_itemsize        # W1 + W2, resident
        + (H + 3 * D) * 4                 # b1 + packed (b2, gamma, beta)
        + 4 * tm_eff * H * 4              # in-kernel f32 temporaries (h, gelu, y, ...)
    )
    # 2x headroom for compiler-managed scratch; never claim all of v7x's VMEM.
    return int(min(64 * 1024 * 1024, max(16 * 1024 * 1024, 2 * tile)))


def noise_processor(noise, w1, b1, w2, b2, gamma, beta, *, eps=1e-5, tm=1024,
                    mxu_dtype=jnp.bfloat16, exact_gelu=False):
    """noise: [..., D]. Returns the same shape/dtype as `noise`."""
    orig_shape = noise.shape
    D = orig_shape[-1]
    H = w1.shape[1]
    x2d = noise.reshape(-1, D)
    M = x2d.shape[0]

    # Past ~2048 rows/tile there is no roofline gain, only VMEM/store pressure.
    tm = max(8, min(int(tm), 2048))

    # Cast weights once for the MXU fast path (bf16 operands, f32 accumulate).
    if mxu_dtype is not None:
        w1 = w1.astype(mxu_dtype)
        w2 = w2.astype(mxu_dtype)

    # Bias / LN params kept in f32; b2, gamma, beta packed into one (3, D) tile.
    b1_2d = b1.reshape(1, H).astype(jnp.float32)
    params = jnp.stack([b2, gamma, beta], axis=0).astype(jnp.float32)

    # Row tiling: no wrapper padding. Ragged boundary block handled by Pallas
    # (OOB rows are computed on garbage but their store is masked). Keep the
    # grid at >= 2 (preferably even) steps so both v7x TensorCores get work.
    if M < 16:
        tm_eff = M                    # one block equal to the full row extent
        grid_m = 1
    else:
        n = max(pl.cdiv(M, tm), 2)
        if n % 2:
            n += 1
        tm_eff = min(tm, _round_up(pl.cdiv(M, n), 8))
        grid_m = pl.cdiv(M, tm_eff)

    in_itemsize = jnp.dtype(x2d.dtype).itemsize
    w_itemsize = jnp.dtype(w1.dtype).itemsize
    cost = pl.CostEstimate(
        flops=4 * M * D * H,                      # two matmuls
        transcendentals=M * H,                    # tanh/erf in GELU
        bytes_accessed=(2 * M * D * in_itemsize   # x read + out write
                        + 2 * D * H * w_itemsize  # weights
                        + (H + 3 * D) * 4),       # biases / LN params
    )

    out = pl.pallas_call(
        functools.partial(_noise_processor_kernel, eps=eps, exact_gelu=exact_gelu),
        out_shape=jax.ShapeDtypeStruct((M, D), noise.dtype),
        grid_spec=pltpu.PrefetchScalarGridSpec(
            num_scalar_prefetch=0,
            grid=(grid_m,),
            in_specs=[
                pl.BlockSpec((tm_eff, D), lambda i: (i, 0)),   # x rows
                pl.BlockSpec((D, H), lambda i: (0, 0)),        # W1 (resident)
                pl.BlockSpec((1, H), lambda i: (0, 0)),        # b1
                pl.BlockSpec((H, D), lambda i: (0, 0)),        # W2 (resident)
                pl.BlockSpec((3, D), lambda i: (0, 0)),        # b2/gamma/beta
            ],
            out_specs=pl.BlockSpec((tm_eff, D), lambda i: (i, 0)),
        ),
        compiler_params=pltpu.CompilerParams(
            dimension_semantics=("parallel",),
            vmem_limit_bytes=_vmem_limit_bytes(tm_eff, D, H, in_itemsize,
                                               in_itemsize, w_itemsize),
        ),
        cost_estimate=cost,
    )(x2d, w1, b1_2d, w2, params)

    return out.reshape(orig_shape)


def init_params(noise_dim, hidden_dim=None, seed=0, dtype=jnp.float32):
    """Deterministic synthetic init matching the PyTorch module's parameter shapes."""
    if hidden_dim is None:
        hidden_dim = noise_dim * 2
    k = jax.random.PRNGKey(seed)
    k1, k2, k3, k4 = jax.random.split(k, 4)
    lim1 = 1.0 / jnp.sqrt(noise_dim).astype(jnp.float32)
    lim2 = 1.0 / jnp.sqrt(hidden_dim).astype(jnp.float32)
    w1 = jax.random.uniform(k1, (noise_dim, hidden_dim), dtype, -lim1, lim1)
    b1 = jax.random.uniform(k2, (hidden_dim,), dtype, -lim1, lim1)
    w2 = jax.random.uniform(k3, (hidden_dim, noise_dim), dtype, -lim2, lim2)
    b2 = jax.random.uniform(k4, (noise_dim,), dtype, -lim2, lim2)
    gamma = jnp.ones((noise_dim,), dtype)
    beta = jnp.zeros((noise_dim,), dtype)
    return w1, b1, w2, b2, gamma, beta


def _reference(noise, w1, b1, w2, b2, gamma, beta, eps=1e-5):
    # Exact (erf) GELU, f32 math -- matches the torch module's defaults.
    h = noise @ w1 + b1
    h = 0.5 * h * (1.0 + jax.lax.erf(h / jnp.sqrt(2.0)))
    y = h @ w2 + b2
    mean = jnp.mean(y, axis=-1, keepdims=True)
    var = jnp.mean((y - mean) ** 2, axis=-1, keepdims=True)
    return (y - mean) / jnp.sqrt(var + eps) * gamma + beta


if __name__ == "__main__":
    # Shapes from SimpleNet: noise_dim = 128, hidden = 2 * noise_dim = 256.
    noise_dim = 128
    hidden_dim = 256

    params = init_params(noise_dim, hidden_dim, seed=0)
    key = jax.random.PRNGKey(0)
    k1, k2, k3 = jax.random.split(key, 3)

    # Case 1: exact-precision path (f32 MXU operands, erf GELU) at the module's
    # native shape [B, noise_dim] -- tight tolerance vs. the f32 reference.
    noise_a = jax.random.normal(k1, (2, noise_dim), dtype=jnp.float32)
    out_a = jax.block_until_ready(
        noise_processor(noise_a, *params, mxu_dtype=None, exact_gelu=True))
    ref_a = _reference(noise_a, *params)
    assert out_a.shape == noise_a.shape and out_a.dtype == noise_a.dtype
    assert jnp.allclose(out_a, ref_a, atol=1e-4, rtol=1e-4), "mismatch (exact path)"

    # Case 2: default fast path (bf16 MXU operands, tanh GELU) with a row count
    # that exercises the multi-step ragged grid (M=200 -> 2 tiles of 104 rows,
    # masked boundary block, no wrapper padding). Mixed-precision policy ->
    # looser tolerance vs. the exact f32 reference.
    noise_b = jax.random.normal(k2, (200, noise_dim), dtype=jnp.float32)
    out_b = jax.block_until_ready(noise_processor(noise_b, *params))
    ref_b = _reference(noise_b, *params)
    err_b = float(jnp.max(jnp.abs(out_b - ref_b)))
    assert out_b.shape == noise_b.shape
    assert err_b < 5e-2, f"mismatch (fast path): max abs err {err_b}"

    # Case 3: bf16 activations end-to-end (halves the dominant HBM traffic).
    noise_c = jax.random.normal(
        k3, (16, noise_dim), dtype=jnp.float32).astype(jnp.bfloat16)
    out_c = jax.block_until_ready(noise_processor(noise_c, *params))
    ref_c = _reference(noise_c.astype(jnp.float32), *params)
    err_c = float(jnp.max(jnp.abs(out_c.astype(jnp.float32) - ref_c)))
    assert out_c.shape == noise_c.shape and out_c.dtype == jnp.bfloat16
    assert err_c < 7e-2, f"mismatch (bf16 path): max abs err {err_c}"

    print("KERNEL_OK")
</pallas_src>

<mosaic_0001>
module attributes {stable_mosaic.version = 11 : i64} {
  func.func @_noise_processor_kernel(%arg0: i32, %arg1: memref<2x128xf32, #tpu.memory_space<vmem>>, %arg2: memref<128x256xf32, #tpu.memory_space<vmem>>, %arg3: memref<1x256xf32, #tpu.memory_space<vmem>>, %arg4: memref<256x128xf32, #tpu.memory_space<vmem>>, %arg5: memref<3x128xf32, #tpu.memory_space<vmem>>, %arg6: memref<2x128xf32, #tpu.memory_space<vmem>>) attributes {dimension_semantics = [#tpu.dimension_semantics<parallel>], iteration_bounds = array<i64: 1>, scalar_prefetch = 0 : i64, scratch_operands = 0 : i64, tpu.core_type = #tpu.core_type<tc>, window_params = [{transform_indices = @transform_0, window_bounds = array<i64: 2, 128>}, {pipeline_mode = #tpu.pipeline_mode<synchronous>, transform_indices = @transform_1, window_bounds = array<i64: 128, 256>}, {pipeline_mode = #tpu.pipeline_mode<synchronous>, transform_indices = @transform_2, window_bounds = array<i64: 1, 256>}, {pipeline_mode = #tpu.pipeline_mode<synchronous>, transform_indices = @transform_3, window_bounds = array<i64: 256, 128>}, {pipeline_mode = #tpu.pipeline_mode<synchronous>, transform_indices = @transform_4, window_bounds = array<i64: 3, 128>}, {transform_indices = @transform_5, window_bounds = array<i64: 2, 128>}]} {
    %c0 = arith.constant 0 : index
    %c0_0 = arith.constant 0 : index
    %0 = vector.load %arg1[%c0, %c0_0] : memref<2x128xf32, #tpu.memory_space<vmem>>, vector<2x128xf32>
    %c0_1 = arith.constant 0 : index
    %c0_2 = arith.constant 0 : index
    %1 = vector.load %arg2[%c0_1, %c0_2] : memref<128x256xf32, #tpu.memory_space<vmem>>, vector<128x256xf32>
    %cst = arith.constant dense<0.000000e+00> : vector<2x256xf32>
    %2 = tpu.matmul %0, %1, %cst {dimension_numbers = #tpu.dot_dimension_numbers<[1], [0], [0], [1], [0, 0, 1, 1], [], []>} : vector<2x128xf32>, vector<128x256xf32>, vector<2x256xf32> -> vector<2x256xf32>
    %c0_3 = arith.constant 0 : index
    %c0_4 = arith.constant 0 : index
    %3 = vector.load %arg3[%c0_3, %c0_4] : memref<1x256xf32, #tpu.memory_space<vmem>>, vector<1x256xf32>
    %4 = vector.broadcast %3 : vector<1x256xf32> to vector<2x256xf32>
    %5 = arith.addf %2, %4 : vector<2x256xf32>
    %cst_5 = arith.constant 5.000000e-01 : f32
    %6 = vector.broadcast %cst_5 : f32 to vector<2x256xf32>
    %7 = arith.mulf %6, %5 : vector<2x256xf32>
    %cst_6 = arith.constant 0.707106769 : f32
    %8 = vector.broadcast %cst_6 : f32 to vector<2x256xf32>
    %9 = arith.mulf %5, %8 : vector<2x256xf32>
    %10 = math.erf %9 : vector<2x256xf32>
    %cst_7 = arith.constant 1.000000e+00 : f32
    %11 = vector.broadcast %cst_7 : f32 to vector<2x256xf32>
    %12 = arith.addf %11, %10 : vector<2x256xf32>
    %13 = arith.mulf %7, %12 : vector<2x256xf32>
    %c0_8 = arith.constant 0 : index
    %c0_9 = arith.constant 0 : index
    %14 = vector.load %arg4[%c0_8, %c0_9] : memref<256x128xf32, #tpu.memory_space<vmem>>, vector<256x128xf32>
    %cst_10 = arith.constant dense<0.000000e+00> : vector<2x128xf32>
    %15 = tpu.matmul %13, %14, %cst_10 {dimension_numbers = #tpu.dot_dimension_numbers<[1], [0], [0], [1], [0, 0, 1, 1], [], []>} : vector<2x256xf32>, vector<256x128xf32>, vector<2x128xf32> -> vector<2x128xf32>
    %c0_11 = arith.constant 0 : index
    %c0_12 = arith.constant 0 : index
    %16 = vector.load %arg5[%c0_11, %c0_12] : memref<3x128xf32, #tpu.memory_space<vmem>>, vector<3x128xf32>
    %17 = vector.extract_strided_slice %16 {offsets = [0, 0], sizes = [1, 128], strides = [1, 1]} : vector<3x128xf32> to vector<1x128xf32>
    %18 = vector.extract_strided_slice %16 {offsets = [1, 0], sizes = [1, 128], strides = [1, 1]} : vector<3x128xf32> to vector<1x128xf32>
    %19 = vector.extract_strided_slice %16 {offsets = [2, 0], sizes = [1, 128], strides = [1, 1]} : vector<3x128xf32> to vector<1x128xf32>
    %20 = vector.broadcast %17 : vector<1x128xf32> to vector<2x128xf32>
    %21 = arith.addf %15, %20 : vector<2x128xf32>
    %cst_13 = arith.constant dense<0.000000e+00> : vector<2xf32>
    %22 = vector.multi_reduction <add>, %21, %cst_13 [1] : vector<2x128xf32> to vector<2xf32>
    %23 = vector.shape_cast %22 : vector<2xf32> to vector<2x1xf32>
    %cst_14 = arith.constant 7.812500e-03 : f32
    %24 = vector.broadcast %cst_14 : f32 to vector<2x1xf32>
    %25 = arith.mulf %23, %24 : vector<2x1xf32>
    %26 = vector.broadcast %25 : vector<2x1xf32> to vector<2x128xf32>
    %27 = arith.subf %21, %26 : vector<2x128xf32>
    %28 = arith.mulf %27, %27 : vector<2x128xf32>
    %cst_15 = arith.constant dense<0.000000e+00> : vector<2xf32>
    %29 = vector.multi_reduction <add>, %28, %cst_15 [1] : vector<2x128xf32> to vector<2xf32>
    %30 = vector.shape_cast %29 : vector<2xf32> to vector<2x1xf32>
    %cst_16 = arith.constant 7.812500e-03 : f32
    %31 = vector.broadcast %cst_16 : f32 to vector<2x1xf32>
    %32 = arith.mulf %30, %31 : vector<2x1xf32>
    %cst_17 = arith.constant 9.99999974E-6 : f32
    %33 = vector.broadcast %cst_17 : f32 to vector<2x1xf32>
    %34 = arith.addf %32, %33 : vector<2x1xf32>
    %35 = math.rsqrt %34 : vector<2x1xf32>
    %36 = vector.broadcast %35 : vector<2x1xf32> to vector<2x128xf32>
    %37 = arith.mulf %27, %36 : vector<2x128xf32>
    %38 = vector.broadcast %18 : vector<1x128xf32> to vector<2x128xf32>
    %39 = arith.mulf %37, %38 : vector<2x128xf32>
    %40 = vector.broadcast %19 : vector<1x128xf32> to vector<2x128xf32>
    %41 = arith.addf %39, %40 : vector<2x128xf32>
    %c0_18 = arith.constant 0 : index
    %c0_19 = arith.constant 0 : index
    %42 = vector.load %arg6[%c0_18, %c0_19] : memref<2x128xf32, #tpu.memory_space<vmem>>, vector<2x128xf32>
    tpu.vector_store %arg6[%c0_18, %c0_19], %41 {strides = array<i32>} : memref<2x128xf32, #tpu.memory_space<vmem>>, vector<2x128xf32>,
    return
  }
  func.func @transform_0(%arg0: i32) -> (i32, i32) {
    %c0_i32 = arith.constant 0 : i32
    %c0_i32_0 = arith.constant 0 : i32
    return %arg0, %c0_i32 : i32, i32
  }
  func.func @transform_1(%arg0: i32) -> (i32, i32) {
    %c0_i32 = arith.constant 0 : i32
    %c0_i32_0 = arith.constant 0 : i32
    %c0_i32_1 = arith.constant 0 : i32
    return %c0_i32, %c0_i32_0 : i32, i32
  }
  func.func @transform_2(%arg0: i32) -> (i32, i32) {
    %c0_i32 = arith.constant 0 : i32
    %c0_i32_0 = arith.constant 0 : i32
    %c0_i32_1 = arith.constant 0 : i32
    return %c0_i32, %c0_i32_0 : i32, i32
  }
  func.func @transform_3(%arg0: i32) -> (i32, i32) {
    %c0_i32 = arith.constant 0 : i32
    %c0_i32_0 = arith.constant 0 : i32
    %c0_i32_1 = arith.constant 0 : i32
    return %c0_i32, %c0_i32_0 : i32, i32
  }
  func.func @transform_4(%arg0: i32) -> (i32, i32) {
    %c0_i32 = arith.constant 0 : i32
    %c0_i32_0 = arith.constant 0 : i32
    %c0_i32_1 = arith.constant 0 : i32
    return %c0_i32, %c0_i32_0 : i32, i32
  }
  func.func @transform_5(%arg0: i32) -> (i32, i32) {
    %c0_i32 = arith.constant 0 : i32
    %c0_i32_0 = arith.constant 0 : i32
    return %arg0, %c0_i32 : i32, i32
  }
}

</mosaic_0001>

<bundles_post_ra>
// kernel: tpu_custom_call.1
= control target key start
LH: loop header
LB: loop body
LE: loop exit
PB: predicated region body
PF: predicated region fallthrough
CT: control target
= control target key end

     0   :  { %10 = vsyncpa [#allocation3], 0  ;;  %s527_s0 = inlined_call_operand.hbm [shape: f32[2,128], index: 0, kind: input, shape index: {}]   ;;  %s528_s1 = inlined_call_operand.hbm [shape: f32[128,256], index: 1, kind: input, shape index: {}]   ;;  %s529_s2 = inlined_call_operand.vmem [shape: f32[1,256], index: 2, kind: input, shape index: {}]   ;;  %s530_s3 = inlined_call_operand.hbm [shape: f32[256,128], index: 3, kind: input, shape index: {}]   ;;  %s531_s4 = inlined_call_operand.vmem [shape: f32[3,128], index: 4, kind: input, shape index: {}]   ;;  %s532_s5 = inlined_call_operand.hbm [shape: f32[2,128], index: 5, kind: output, shape index: {}]  }
   0x1   :  { %11 = vsyncpa [#allocation6], 0 }
   0x2   :  { %12 = vsyncpa [#allocation4], 0  ;;  %s470_s18 = smov [#allocation5]  }
   0x3   :  { %s28_s19 = sshll.u32 %s470_s18, 4  ;;  %s29_s19 = int_to_ptr.vmem [resolvable:$true] %s28_s19 }
   0x4   :  { %s392_s20 = scalar_lea.vmem %s29_s19, 4096  ;;  %p397_p1 = scmp.lt.s32.totalorder %s29_s19, %s29_s19 }
   0x5   :  { %p393_p0 = scmp.ne.s32.totalorder %s29_s19, %s392_s20  ;;  %p398_p2 = scmp.lt.s32.totalorder %s392_s20, %s392_s20 }
   0x7   :  { %p399_p3 = por %p398_p2, %p397_p1 }
   0x9   :  { %p400_p4 = pnand %p399_p3, %p393_p0 }
   0xb   :  { %403 = shalt.err (!%p400_p4)
}
   0xc   :  { %s471_s21 = smov 256   ;;  %s472_s22 = smov 16  }
   0xd   :  { %34 = dma.hbm_to_vmem [thread:$0]  %s528_s1, 4096, %s29_s19, [#allocation6], %s471_s21, %s471_s21, %s472_s22  }
   0xe   :  { %s473_s25 = smov [#allocation2]   ;;  %s474_s27 = smov [#allocation7]  }
   0xf   :  { %s19_s26 = sshll.u32 %s473_s25, 4  ;;  %s42_s28 = sshll.u32 %s474_s27, 4  ;;  %s20_s26 = int_to_ptr.vmem [resolvable:$true] %s19_s26  ;;  %s43_s28 = int_to_ptr.vmem [resolvable:$true] %s42_s28 }
  0x10   :  { %s412_s29 = scalar_lea.vmem %s20_s26, 32  ;;  %p417_p6 = scmp.lt.s32.totalorder %s20_s26, %s20_s26 }
  0x11   :  { %p413_p5 = scmp.ne.s32.totalorder %s20_s26, %s412_s29  ;;  %p418_p7 = scmp.lt.s32.totalorder %s412_s29, %s412_s29 }
  0x13   :  { %p419_p8 = por %p418_p7, %p417_p6 }
  0x15   :  { %p420_p9 = pnand %p419_p8, %p413_p5 }
  0x17   :  { %423 = shalt.err (!%p420_p9)
}
  0x18   :  { %22 = dma.hbm_to_vmem [thread:$0]  %s527_s0, 32, %s20_s26, [#allocation3]  }
  0x19   :  { %s432_s7 = scalar_lea.vmem %s43_s28, 4096  ;;  %p437_p11 = scmp.lt.s32.totalorder %s43_s28, %s43_s28 }
  0x1a   :  { %p433_p10 = scmp.ne.s32.totalorder %s43_s28, %s432_s7  ;;  %p438_p12 = scmp.lt.s32.totalorder %s432_s7, %s432_s7 }
  0x1c   :  { %p439_p13 = por %p438_p12, %p437_p11 }
  0x1e   :  { %p440_p0 = pnand %p439_p13, %p433_p10 }
  0x20   :  { %443 = shalt.err (!%p440_p0)
}
  0x21   :  { %s475_s1 = smov 128   ;;  %s476_s8 = smov 8  }
  0x22   :  { %48 = dma.hbm_to_vmem [thread:$0]  %s530_s3, 4096, %s43_s28, [#allocation6], %s475_s1, %s475_s1, %s476_s8  }
  0x23   :  { %464 = dma.done.wait [#allocation3], 32  }
  0x24   :  { %465 = vsyncadd [#allocation3], 4294967264 }
  0x25   :  { %466 = dma.done.wait [#allocation6], 8192  }
  0x26   :  { %467 = vsyncadd [#allocation6], 4294959104  ;;  %v477_v0 = vmov 0.0   ;;  %v92_v1 = vld [vmem:[#allocation5 + $0xf8] sm:$0xff]  ;;  %v91_v2 = vld [vmem:[#allocation5 + $0xf0] sm:$0xff]  ;;  %vm293_vm0 = vcmask 1041408  }
  0x27   :  { %169 = vmatprep.mubr.f32.mxu0 %v477_v0  ;;  %v90_v3 = vld [vmem:[#allocation5 + $0xe8] sm:$0xff]  ;;  %105 = vmatprep.subr.mxu0 %v92_v1  ;;  %v89_v4 = vld [vmem:[#allocation5 + $0xe0] sm:$0xff]  ;;  %v88_v5 = vld [vmem:[#allocation5 + $0xd8] sm:$0xff] }
  0x28   :  { %106 = vmatpush1.msra.mxu0 %v91_v2  ;;  %v87_v6 = vld [vmem:[#allocation5 + $0xd0] sm:$0xff]  ;;  %v86_v7 = vld [vmem:[#allocation5 + $0xc8] sm:$0xff]  ;;  %v85_v8 = vld [vmem:[#allocation5 + $0xc0] sm:$0xff]  ;;  %v95_v2 = vlaneseq }
  0x29   :  { %107 = vmatprep.subr.mxu0 %v90_v3  ;;  %v84_v9 = vld [vmem:[#allocation5 + $0xb8] sm:$0xff]  ;;  %v83_v10 = vld [vmem:[#allocation5 + $0xb0] sm:$0xff]  ;;  %v82_v11 = vld [vmem:[#allocation5 + $0xa8] sm:$0xff] }
  0x2a   :  { %108 = vmatpush1.msra.mxu0 %v89_v4  ;;  %v81_v12 = vld [vmem:[#allocation5 + $0xa0] sm:$0xff]  ;;  %v80_v13 = vld [vmem:[#allocation5 + $0x98] sm:$0xff]  ;;  %v79_v14 = vld [vmem:[#allocation5 + $0x90] sm:$0xff]  ;;  %v96_v3 = vshrl.u32 %v95_v2, 7 }
  0x2b   :  { %109 = vmatprep.subr.mxu0 %v88_v5  ;;  %v217_v15 = vld [vmem:[#allocation7 + $0xf8] sm:$0xff]  ;;  %v216_v17 = vld [vmem:[#allocation7 + $0xf0] sm:$0xff]  ;;  %v78_v18 = vld [vmem:[#allocation5 + $0x88] sm:$0xff] }
  0x2c   :  { %110 = vmatpush1.msra.mxu0 %v87_v6  ;;  %v201_v16 = vld [vmem:[#allocation7 + $0x78] sm:$0xff]  ;;  %334 = vmatprep.subr.mxu1 %v217_v15  ;;  %v200_v19 = vld [vmem:[#allocation7 + $0x70] sm:$0xff]  ;;  %v77_v20 = vld [vmem:[#allocation5 + $0x80] sm:$0xff]  ;;  %v97_v4 = vsub.s32 0, %v96_v3  ;;  %v101_v6 = vsub.s32 1, %v96_v3 }
  0x2d   :  { %111 = vmatprep.subr.mxu0 %v86_v7  ;;  %335 = vmatpush3.msra.mxu1 %v201_v16  ;;  %v215_v21 = vld [vmem:[#allocation7 + $0xe8] sm:$0xff]  ;;  %v76_v22 = vld [vmem:[#allocation5 + $0x78] sm:$0xff]  ;;  %v75_v24 = vld [vmem:[#allocation5 + $0x70] sm:$0xff] }
  0x2e   :  { %112 = vmatpush1.msra.mxu0 %v85_v8  ;;  %336 = vmatprep.subr.mxu1 %v216_v17  ;;  %v199_v23 = vld [vmem:[#allocation7 + $0x68] sm:$0xff]  ;;  %v73_v26 = vld [vmem:[#allocation5 + $0x60] sm:$0xff]  ;;  %v72_v27 = vld [vmem:[#allocation5 + $0x58] sm:$0xff] }
  0x2f   :  { %113 = vmatprep.subr.mxu0 %v84_v9  ;;  %337 = vmatpush3.msra.mxu1 %v200_v19  ;;  %v74_v25 = vld [vmem:[#allocation5 + $0x68] sm:$0xff]  ;;  %v71_v28 = vld [vmem:[#allocation5 + $0x50] sm:$0xff]  ;;  %v69_v30 = vld [vmem:[#allocation5 + $0x40] sm:$0xff] }
  0x30   :  { %114 = vmatpush1.msra.mxu0 %v83_v10  ;;  %338 = vmatprep.subr.mxu1 %v215_v21  ;;  %v70_v29 = vld [vmem:[#allocation5 + $0x48] sm:$0xff]  ;;  %v68_v31 = vld [vmem:[#allocation5 + $0x38] sm:$0xff]  ;;  %v67_v32 = vld [vmem:[#allocation5 + $0x30] sm:$0xff] }
  0x31   :  { %115 = vmatprep.subr.mxu0 %v82_v11  ;;  %339 = vmatpush3.msra.mxu1 %v199_v23  ;;  %v66_v33 = vld [vmem:[#allocation5 + $0x28] sm:$0xff]  ;;  %v65_v34 = vld [vmem:[#allocation5 + $0x20] sm:$0xff]  ;;  %v64_v35 = vld [vmem:[#allocation5 + $0x18] sm:$0xff] }
  0x32   :  { %116 = vmatpush1.msra.mxu0 %v81_v12  ;;  %v63_v36 = vld [vmem:[#allocation5 + $0x10] sm:$0xff]  ;;  %v62_v37 = vld [vmem:[#allocation5 + $0x8] sm:$0xff]  ;;  %v61_v38 = vld [vmem:[#allocation5] sm:$0xff] }
  0x33   :  { %117 = vmatprep.subr.mxu0 %v80_v13  ;;  %v60_v39 = vld [vmem:[#allocation2] sm:$0x3]  ;;  %v214_v40 = vld [vmem:[#allocation7 + $0xe0] sm:$0xff]  ;;  %v212_v44 = vld [vmem:[#allocation7 + $0xd0] sm:$0xff] }
  0x34   :  { %118 = vmatpush1.msra.mxu0 %v79_v14  ;;  %340 = vmatprep.subr.mxu1 %v214_v40  ;;  %v198_v41 = vld [vmem:[#allocation7 + $0x60] sm:$0xff]  ;;  %v213_v42 = vld [vmem:[#allocation7 + $0xd8] sm:$0xff]  ;;  %v196_v45 = vld [vmem:[#allocation7 + $0x50] sm:$0xff] }
  0x35   :  { %119 = vmatprep.subr.mxu0 %v78_v18  ;;  %341 = vmatpush3.msra.mxu1 %v198_v41  ;;  %v197_v43 = vld [vmem:[#allocation7 + $0x58] sm:$0xff]  ;;  %v211_v46 = vld [vmem:[#allocation7 + $0xc8] sm:$0xff]  ;;  %v210_v48 = vld [vmem:[#allocation7 + $0xc0] sm:$0xff] }
  0x36   :  { %120 = vmatpush1.msra.mxu0 %v77_v20  ;;  %342 = vmatprep.subr.mxu1 %v213_v42  ;;  %v195_v47 = vld [vmem:[#allocation7 + $0x48] sm:$0xff]  ;;  %v194_v49 = vld [vmem:[#allocation7 + $0x40] sm:$0xff]  ;;  %v209_v50 = vld [vmem:[#allocation7 + $0xb8] sm:$0xff] }
  0x37   :  { %121 = vmatprep.subr.mxu0 %v76_v22  ;;  %343 = vmatpush3.msra.mxu1 %v197_v43  ;;  %v193_v51 = vld [vmem:[#allocation7 + $0x38] sm:$0xff]  ;;  %v208_v52 = vld [vmem:[#allocation7 + $0xb0] sm:$0xff]  ;;  %v207_v54 = vld [vmem:[#allocation7 + $0xa8] sm:$0xff] }
  0x38   :  { %122 = vmatpush1.msra.mxu0 %v75_v24  ;;  %344 = vmatprep.subr.mxu1 %v212_v44  ;;  %v192_v53 = vld [vmem:[#allocation7 + $0x30] sm:$0xff]  ;;  %v191_v55 = vld [vmem:[#allocation7 + $0x28] sm:$0xff]  ;;  %v206_v56 = vld [vmem:[#allocation7 + $0xa0] sm:$0xff] }
  0x39   :  { %123 = vmatprep.subr.mxu0 %v74_v25  ;;  %345 = vmatpush3.msra.mxu1 %v196_v45  ;;  %v190_v57 = vld [vmem:[#allocation7 + $0x20] sm:$0xff]  ;;  %v205_v58 = vld [vmem:[#allocation7 + $0x98] sm:$0xff]  ;;  %v204_v60 = vld [vmem:[#allocation7 + $0x90] sm:$0xff] }
  0x3a   :  { %124 = vmatpush1.msra.mxu0 %v73_v26  ;;  %346 = vmatprep.subr.mxu1 %v211_v46  ;;  %v189_v59 = vld [vmem:[#allocation7 + $0x18] sm:$0xff]  ;;  %v188_v61 = vld [vmem:[#allocation7 + $0x10] sm:$0xff]  ;;  %v203_v62 = vld [vmem:[#allocation7 + $0x88] sm:$0xff] }
  0x3b   :  { %125 = vmatprep.subr.mxu0 %v72_v27  ;;  %347 = vmatpush3.msra.mxu1 %v195_v47  ;;  %v187_v63 = vld [vmem:[#allocation7 + $0x8] sm:$0xff]  ;;  %v202_v0 = vld [vmem:[#allocation7 + $0x80] sm:$0xff]  ;;  %v93_v5 = vld [vmem:[%s529_s2] sm:$0x3] }
  0x3c   :  { %126 = vmatpush1.msra.mxu0 %v71_v28  ;;  %348 = vmatprep.subr.mxu1 %v210_v48  ;;  %v186_v1 = vld [vmem:[#allocation7] sm:$0xff]  ;;  %v98_v7 = vrot.slane %v93_v5, %v97_v4  ;;  %v102_v8 = vrot.slane %v93_v5, %v101_v6  ;;  %v218_v23 = vld [vmem:[%s531_s4] sm:$0x7]  ;;  %s478_s4 = smov [#allocation8]  }
  0x3d   :  { %127 = vmatprep.subr.mxu0 %v70_v29  ;;  %349 = vmatpush3.msra.mxu1 %v194_v49  ;;  %v222_v25 = vrot.slane %v218_v23, %v97_v4  ;;  %s324_s12 = sshll.u32 %s478_s4, 4  ;;  %s325_s12 = int_to_ptr.vmem [resolvable:$true] %s324_s12 }
  0x3e   :  { %128 = vmatpush1.msra.mxu0 %v69_v30  ;;  %350 = vmatprep.subr.mxu1 %v209_v50  ;;  %s444_s13 = scalar_lea.vmem %s325_s12, 32  ;;  %p449_p2 = scmp.lt.s32.totalorder %s325_s12, %s325_s12 }
  0x3f   :  { %129 = vmatprep.subr.mxu0 %v68_v31  ;;  %351 = vmatpush3.msra.mxu1 %v193_v51  ;;  %p445_p1 = scmp.ne.s32.totalorder %s325_s12, %s444_s13  ;;  %p450_p3 = scmp.lt.s32.totalorder %s444_s13, %s444_s13 }
  0x40   :  { %130 = vmatpush1.msra.mxu0 %v67_v32  ;;  %352 = vmatprep.subr.mxu1 %v208_v52 }
  0x41   :  { %131 = vmatprep.subr.mxu0 %v66_v33  ;;  %353 = vmatpush3.msra.mxu1 %v192_v53  ;;  %p451_p4 = por %p450_p3, %p449_p2 }
  0x42   :  { %132 = vmatpush1.msra.mxu0 %v65_v34  ;;  %354 = vmatprep.subr.mxu1 %v207_v54 }
  0x43   :  { %133 = vmatprep.subr.mxu0 %v64_v35  ;;  %355 = vmatpush3.msra.mxu1 %v191_v55  ;;  %p452_p5 = pnand %p451_p4, %p445_p1 }
  0x44   :  { %134 = vmatpush1.msra.mxu0 %v63_v36  ;;  %356 = vmatprep.subr.mxu1 %v206_v56 }
  0x45   :  { %135 = vmatprep.subr.mxu0 %v62_v37  ;;  %357 = vmatpush3.msra.mxu1 %v190_v57 }
  0x46   :  { %136 = vmatpush1.msra.mxu0 %v61_v38  ;;  %358 = vmatprep.subr.mxu1 %v205_v58  ;;  %v314_v38 = vsub.s32 2, %v96_v3 }
  0x47   :  { %170 = vmatmul.mubr.f32.vlgmr.msra.gmra.mxu0 %v60_v39  ;;  %359 = vmatpush3.msra.mxu1 %v189_v59  ;;  %v310_v39 = vrot.slane %v218_v23, %v101_v6 }
  0x48   :  { %360 = vmatprep.subr.mxu1 %v204_v60  ;;  %v315_v42 = vrot.slane %v218_v23, %v314_v38 }
  0x49   :  { %361 = vmatpush3.msra.mxu1 %v188_v61 }
  0x4a   :  { %362 = vmatprep.subr.mxu1 %v203_v62 }
  0x4b   :  { %363 = vmatpush3.msra.mxu1 %v187_v63 }
  0x4c   :  { %364 = vmatprep.subr.mxu1 %v202_v0 }
  0x4d   :  { %365 = vmatpush3.msra.mxu1 %v186_v1 }
 0x107   :  { %v171_v9 = vpop.f32.mrf.mxu0 }
 0x108   :  { %v172_v10 = vadd.f32 %v171_v9, %v98_v7 }
 0x109   :  { %v173_v11 = vpop.f32.mrf.mxu0 }
 0x10a   :  { %v178_v12 = vmul.f32 0.70710677, %v172_v10  ;;  %v174_v13 = vadd.f32 %v173_v11, %v102_v8  ;;  %v176_v20 = vmul.f32 0.5, %v172_v10 }
 0x10c   :  { %378 = verf.f32 %v178_v12  ;;  %v179_v14 = vmul.f32 0.70710677, %v174_v13  ;;  %v177_v18 = vmul.f32 0.5, %v174_v13 }
 0x10e   :  { %380 = verf.f32 %v179_v14 }
 0x119   :  { %v379_v15 = vpop.eup %378 }
 0x11a   :  { %v182_v17 = vadd.f32 1.0, %v379_v15 }
 0x11b   :  { %v381_v16 = vpop.eup %380 }
 0x11c   :  { %v183_v19 = vadd.f32 1.0, %v381_v16  ;;  %v184_v22 = vmul.f32 %v182_v17, %v176_v20 }
 0x11e   :  { %v185_v21 = vmul.f32 %v183_v19, %v177_v18 }
 0x120   :  { %287 = vmatprep.mubr.f32.mxu1 %v185_v21 }
 0x121   :  { %288 = vmatmul.mubr.f32.vlgmr.msra.gmra.mxu1 %v184_v22 }
 0x1e1   :  { %v366_v24 = vpop.f32.mrf.mxu1 }
 0x1e3   :  { %v367_v26 = vpop.f32.mrf.mxu1 }
 0x1e4   :  { %v368_v27 = vadd.f32 %v367_v26, %v366_v24 }
 0x1e6   :  { %v290_v28 = vadd.f32 %v368_v27, %v222_v25 }
 0x1e8   :  { %v294_v29 = vsel %vm293_vm0, %v290_v28, 0.0 }
 0x1e9   :  { %295 = vadd.xlane.f32.xlu0 %v294_v29 }
 0x272   :  { %v296_v30 = vpop.xlane.xlu0 %295 }
 0x273   :  { %v297_v31 = vmul.f32 0.0078125, %v296_v30 }
 0x275   :  { %v298_v32 = vsub.f32 %v290_v28, %v297_v31 }
 0x277   :  { %v299_v33 = vmul.f32 %v298_v32, %v298_v32 }
 0x279   :  { %v300_v34 = vsel %vm293_vm0, %v299_v33, 0.0 }
 0x27a   :  { %301 = vadd.xlane.f32.xlu0 %v300_v34 }
 0x303   :  { %v302_v35 = vpop.xlane.xlu0 %301 }
 0x304   :  { %v303_v36 = vmul.f32 0.0078125, %v302_v35 }
 0x306   :  { %v304_v37 = vadd.f32 1e-05, %v303_v36 }
 0x308   :  { %382 = vrsqrt.f32 %v304_v37 }
 0x315   :  { %v383_v40 = vpop.eup %382 }
 0x316   :  { %v306_v41 = vmul.f32 %v383_v40, %v298_v32 }
 0x318   :  { %v311_v43 = vmul.f32 %v310_v39, %v306_v41 }
 0x31a   :  { %v316_v44 = vadd.f32 %v315_v42, %v311_v43 }
 0x31c   :  { %317 = vst [vmem:[#allocation8] sm:$0x3] %v316_v44 }
 0x31d   :  { %455 = shalt.err (!%p452_p5)
}
 0x31e   :  { %327 = dma.vmem_to_hbm [thread:$0]  %s325_s12, 32, %s532_s5, [#allocation4]  }
 0x31f   :  { %468 = dma.done.wait [#allocation4], 32  }
 0x320   :  { %469 = vsyncadd [#allocation4], 4294967264 }
 0x321   :  { %331 = vsyncpa [#allocation3], 1 }
 0x322   :  { %332 = vsyncpa [#allocation6], 1 }
 0x323   :  { %333 = vsyncpa [#allocation4], 1 }

</bundles_post_ra>
